<compile_context>
chip_gen: v5e
topology: v5e:2x2
jax: 0.10.0
libtpu: 0.0.40
codegen_flags: <defaults>
</compile_context>

<pallas_src>
import functools
from typing import NamedTuple, Optional

import jax
import jax.numpy as jnp
from jax.experimental import pallas as pl
from jax.experimental.pallas import tpu as pltpu


# ------------------------------- Pallas kernel -------------------------------

def _relu_kernel(x_ref, o_ref):
    # Elementwise ReLU on the whole VMEM block (VPU work only).
    o_ref[...] = jnp.maximum(x_ref[...], 0)


_LANE = 128
_MAX_LANE_MULT = 64            # cap the slab's minor dim at 64 * 128 = 8192 lanes


# --------------------------- generation-aware config --------------------------

class _HwCfg(NamedTuple):
    block_bytes: int                   # target bytes per (rows, C) block
    vmem_limit_bytes: Optional[int]    # scoped-VMEM budget for the pallas_call
    min_blocks: int                    # minimum grid size when tensor is big enough


_HW_CONFIGS = {
    # v7x: ~3.2 TB/s HBM -> 6 MiB blocks (~1.9 us stream vs ~0.35 us step
    #      overhead). Double-buffered in+out = 24 MiB; pin at 28 MiB, under the
    #      32 MiB scoped default and well under 64 MiB physical VMEM.
    #      min_blocks=2 so both TensorCores get work on mid-sized activations.
    "v7x": _HwCfg(block_bytes=6 << 20, vmem_limit_bytes=28 << 20, min_blocks=2),
    # v6e: ~1.4 TB/s -> 4 MiB blocks (16 MiB double-buffered; 24 MiB budget
    #      fits the 32 MiB scoped default with headroom).
    "v6e": _HwCfg(block_bytes=4 << 20, vmem_limit_bytes=24 << 20, min_blocks=1),
    # v5e: ~0.8 TB/s -> 2 MiB blocks already make per-step overhead <7%; stay
    #      well under the 16 MiB scoped default.
    "v5e": _HwCfg(block_bytes=2 << 20, vmem_limit_bytes=12 << 20, min_blocks=1),
    # Unknown / older generations: conservative sizing, compiler defaults.
    "unknown": _HwCfg(block_bytes=2 << 20, vmem_limit_bytes=None, min_blocks=1),
}


@functools.lru_cache(maxsize=1)
def _hw_cfg() -> _HwCfg:
    try:
        kind = jax.devices()[0].device_kind.lower()
    except Exception:  # pragma: no cover - defensive
        kind = ""
    if "v7" in kind:
        return _HW_CONFIGS["v7x"]
    if "v6" in kind:
        return _HW_CONFIGS["v6e"]
    if "v5e" in kind or "v5 lite" in kind or "v5lite" in kind:
        return _HW_CONFIGS["v5e"]
    return _HW_CONFIGS["unknown"]


# ------------------------------- tiling helpers -------------------------------

def _min_sublane(dtype) -> int:
    """Minimum sublane multiple for the block's second-to-last dim.

    Note: unlisted itemsizes (e.g. sub-byte dtypes) fall back to 8, which may
    be too small for their packing; such dtypes are not expected here.
    """
    itemsize = jnp.dtype(dtype).itemsize
    return {4: 8, 2: 16, 1: 32}.get(itemsize, 8)


def _slab_factorization(x):
    """Pick a lane-dense (R, C) factorization of x (metadata-only reshape).

    Returns (R, C) with R * C == x.size and C a multiple of 128 (<= 8192), or
    None if no such factorization exists (numel not a multiple of 128 and
    trailing dim not lane friendly).
    """
    n = x.size
    last = x.shape[-1] if x.ndim else 1
    if x.ndim >= 2 and last % _LANE == 0 and last <= _MAX_LANE_MULT * _LANE:
        # Trailing dim already lane friendly: keep it as the slab's minor dim
        # so only leading dims collapse (no relayout risk on the minor axis).
        C = last
    elif n % _LANE == 0:
        q = n // _LANE
        c = 1
        for cand in range(min(q, _MAX_LANE_MULT), 0, -1):
            if q % cand == 0:
                c = cand
                break
        C = c * _LANE
    else:
        return None
    return n // C, C


def _choose_block_rows(R: int, C: int, dtype, cfg: _HwCfg) -> int:
    """Row-block size: dtype-aware sublane multiple, cfg.block_bytes target,
    and (on v7x) at least cfg.min_blocks blocks when the tensor allows it."""
    s = _min_sublane(dtype)
    itemsize = jnp.dtype(dtype).itemsize
    target_rows = max(s, (cfg.block_bytes // (C * itemsize)) // s * s)
    rows = min(R, target_rows)          # rows == R -> full-dims block (exempt)
    if cfg.min_blocks > 1 and R >= cfg.min_blocks * s:
        # Guarantee a multi-block grid so both v7x TensorCores get work.
        rows = min(rows, max(s, (R // cfg.min_blocks) // s * s))
    return rows


# ------------------------------- pallas wrapper -------------------------------

def _relu_pallas_2d(x2d, block_rows: int, cfg: _HwCfg):
    """x2d: (R, C) lane-dense slab. Returns relu(x2d)."""
    R, C = x2d.shape
    itemsize = jnp.dtype(x2d.dtype).itemsize
    nbytes = R * C * itemsize
    return pl.pallas_call(
        _relu_kernel,
        out_shape=jax.ShapeDtypeStruct((R, C), x2d.dtype),
        grid_spec=pltpu.PrefetchScalarGridSpec(
            num_scalar_prefetch=0,
            grid=(pl.cdiv(R, block_rows),),
            in_specs=[pl.BlockSpec((block_rows, C), lambda i: (i, 0))],
            out_specs=pl.BlockSpec((block_rows, C), lambda i: (i, 0)),
        ),
        # Straight-through backward never needs x, so the input buffer is dead
        # after the forward: allow in-place ReLU in HBM. XLA inserts a
        # protective copy whenever the input must stay live, so this is safe.
        input_output_aliases={0: 0},
        # Purely HBM-bound: 1 compare/select per element, read + write n bytes.
        cost_estimate=pl.CostEstimate(
            flops=R * C, transcendentals=0, bytes_accessed=2 * nbytes),
        compiler_params=pltpu.CompilerParams(
            # "parallel" lets the runtime shard the 1-D grid across both v7x
            # TensorCores; it is a no-op on single-TC v5e/v6e.
            # TODO(synk): confirm with an xprof trace on v7x that the grid is
            # actually core-sharded; if not, switch to pltpu.CORE_PARALLEL.
            dimension_semantics=("parallel",),
            vmem_limit_bytes=cfg.vmem_limit_bytes,
        ),
    )(x2d)


def _apply_relu_pallas(x):
    """Apply ReLU via the Pallas kernel for any shape/dtype."""
    orig_shape = x.shape
    n = x.size
    if n == 0:
        return x
    cfg = _hw_cfg()

    slab = _slab_factorization(x)
    if slab is not None:
        # Common case: metadata-only reshape, zero extra HBM passes.
        R, C = slab
        rows = _choose_block_rows(R, C, x.dtype, cfg)
        return _relu_pallas_2d(x.reshape(R, C), rows, cfg).reshape(orig_shape)

    # Rare path (numel % 128 != 0 and trailing dim not lane friendly): run the
    # aligned prefix through the kernel and the <=127-element tail through a
    # tiny XLA op. No whole-array jnp.pad / slice round trip.
    flat = x.reshape(-1)
    n_main = (n // _LANE) * _LANE
    if n_main == 0:
        # Fewer than 128 elements total: a kernel launch is not worth it.
        return jnp.maximum(x, 0)
    main, tail = flat[:n_main], flat[n_main:]
    Rm, Cm = _slab_factorization(main)
    rows = _choose_block_rows(Rm, Cm, x.dtype, cfg)
    y_main = _relu_pallas_2d(main.reshape(Rm, Cm), rows, cfg).reshape(-1)
    y = jnp.concatenate([y_main, jnp.maximum(tail, 0)])
    return y.reshape(orig_shape)


# --------------------------- straight-through glue ---------------------------

def straight_backprop(function):
    """JAX port of homura straight_backprop: forward = function, backward = id."""

    @jax.custom_vjp
    def fn(x):
        return function(x)

    def _fwd(x):
        return function(x), None

    def _bwd(_, g):
        # "Straight" backward: gradient passes through unchanged.
        return (g,)

    fn.defvjp(_fwd, _bwd)
    return fn


# ReLU hot path runs in the Pallas kernel.
straight_backprop_relu = straight_backprop(_apply_relu_pallas)


class StraightBackprop:
    """JAX/Pallas port of homura StraightBackprop(F.relu)."""

    def __init__(self, function=None):
        if function is None:
            self._fn = straight_backprop_relu        # Pallas-backed ReLU
        else:
            self._fn = straight_backprop(function)   # plain-JAX fallback

    def __call__(self, x):
        return self._fn(x)


# ----------------------------------- demo ------------------------------------

if __name__ == "__main__":
    key = jax.random.PRNGKey(0)
    # NCHW input, same convention as the PyTorch module.
    x = jax.random.normal(key, (2, 4, 16, 16), dtype=jnp.float32)

    module = StraightBackprop()
    y = jax.block_until_ready(module(x))
    assert jnp.allclose(y, jnp.maximum(x, 0.0)), "forward mismatch"

    # Straight backward check: grad of sum(fn(x)) should be all-ones.
    g = jax.block_until_ready(jax.grad(lambda t: straight_backprop_relu(t).sum())(x))
    assert jnp.allclose(g, jnp.ones_like(x)), "straight backward mismatch"

    # Larger f32 input exercising the real block-sizing path.
    x_big = jax.random.normal(jax.random.PRNGKey(1), (16, 64, 32, 32), jnp.float32)
    y_big = jax.block_until_ready(module(x_big))
    assert jnp.allclose(y_big, jnp.maximum(x_big, 0.0)), "big forward mismatch"

    # Explicit multi-block grid (grid > 1) regardless of generation config.
    x2d = jax.random.normal(jax.random.PRNGKey(2), (64, 256), jnp.float32)
    y2d = jax.block_until_ready(_relu_pallas_2d(x2d, block_rows=8, cfg=_hw_cfg()))
    assert jnp.allclose(y2d, jnp.maximum(x2d, 0.0)), "multi-block forward mismatch"

    # bf16 input exercising the dtype-aware sublane path.
    x_bf = x.astype(jnp.bfloat16)
    y_bf = jax.block_until_ready(module(x_bf))
    assert jnp.array_equal(y_bf, jnp.maximum(x_bf, 0)), "bf16 forward mismatch"

    # Rare path: numel not a multiple of 128 (aligned prefix + tiny tail op).
    x_odd = jax.random.normal(jax.random.PRNGKey(3), (5, 131), jnp.float32)
    y_odd = jax.block_until_ready(module(x_odd))
    assert jnp.allclose(y_odd, jnp.maximum(x_odd, 0.0)), "odd-size forward mismatch"

    print("KERNEL_OK")
</pallas_src>

<mosaic_0001>
module attributes {stable_mosaic.version = 11 : i64} {
  func.func @_relu_kernel(%arg0: i32, %arg1: memref<1x2048xf32, #tpu.memory_space<vmem>>, %arg2: memref<1x2048xf32, #tpu.memory_space<vmem>>) attributes {dimension_semantics = [#tpu.dimension_semantics<parallel>], iteration_bounds = array<i64: 1>, scalar_prefetch = 0 : i64, scratch_operands = 0 : i64, tpu.core_type = #tpu.core_type<tc>, window_params = [{transform_indices = @transform_0, window_bounds = array<i64: 1, 2048>}, {transform_indices = @transform_1, window_bounds = array<i64: 1, 2048>}]} {
    %c0 = arith.constant 0 : index
    %c0_0 = arith.constant 0 : index
    %0 = vector.load %arg1[%c0, %c0_0] : memref<1x2048xf32, #tpu.memory_space<vmem>>, vector<1x2048xf32>
    %cst = arith.constant 0.000000e+00 : f32
    %1 = vector.broadcast %cst : f32 to vector<1x2048xf32>
    %2 = arith.maximumf %0, %1 : vector<1x2048xf32>
    %c0_1 = arith.constant 0 : index
    %c0_2 = arith.constant 0 : index
    %3 = vector.load %arg2[%c0_1, %c0_2] : memref<1x2048xf32, #tpu.memory_space<vmem>>, vector<1x2048xf32>
    tpu.vector_store %arg2[%c0_1, %c0_2], %2 {strides = array<i32>} : memref<1x2048xf32, #tpu.memory_space<vmem>>, vector<1x2048xf32>,
    return
  }
  func.func @transform_0(%arg0: i32) -> (i32, i32) {
    %c0_i32 = arith.constant 0 : i32
    %c0_i32_0 = arith.constant 0 : i32
    return %arg0, %c0_i32 : i32, i32
  }
  func.func @transform_1(%arg0: i32) -> (i32, i32) {
    %c0_i32 = arith.constant 0 : i32
    %c0_i32_0 = arith.constant 0 : i32
    return %arg0, %c0_i32 : i32, i32
  }
}

</mosaic_0001>

<bundles_post_ra>
// kernel: tpu_custom_call.1
= control target key start
LH: loop header
LB: loop body
LE: loop exit
PB: predicated region body
PF: predicated region fallthrough
CT: control target
= control target key end

     0   :  { %6 = vsyncpa [#allocation3], 0  ;;  %s118_s0 = inlined_call_operand.hbm [shape: f32[1,2048], index: 0, kind: input, shape index: {}, may-alias: {0,1}]   ;;  %s119_s1 = inlined_call_operand.hbm [shape: f32[1,2048], index: 1, kind: output, shape index: {}, may-alias: {0,1}]  }
   0x1   :  { %7 = vsyncpa [#allocation4], 0  ;;  %s13_s8 = sshll.u32 %s118_s0, 4  ;;  %s100_s9 = smov [#allocation2]   ;;  %s14_s8 = int_to_ptr.hbm [resolvable:$true] %s13_s8 }
   0x2   :  { %s15_s10 = sshll.u32 %s100_s9, 4  ;;  %s16_s10 = int_to_ptr.vmem [resolvable:$true] %s15_s10 }
   0x3   :  { %18 = dma.hbm_to_vmem [thread:$0]  %s14_s8, 256, %s16_s10, [#allocation3]  }
   0x4   :  { %96 = dma.done.wait [#allocation3], 256  }
   0x5   :  { %97 = vsyncadd [#allocation3], 4294967040  ;;  %s101_s11 = smov [#allocation5]   ;;  %s36_s15 = sshll.u32 %s119_s1, 4  ;;  %v23_v0 = vld [vmem:[#allocation2] sm:$0xff]  ;;  %v24_v1 = vld [vmem:[#allocation2 + $0x8] sm:$0xff]  ;;  %s37_s15 = int_to_ptr.hbm [resolvable:$true] %s36_s15 }
   0x6   :  { %s34_s12 = sshll.u32 %s101_s11, 4  ;;  %v25_v2 = vmax.f32 %v23_v0, 0.0  ;;  %v26_v3 = vmax.f32 %v24_v1, 0.0  ;;  %s35_s12 = int_to_ptr.vmem [resolvable:$true] %s34_s12 }
   0x8   :  { %27 = vst [vmem:[#allocation5] sm:$0xff] %v25_v2 }
   0x9   :  { %28 = vst [vmem:[#allocation5 + $0x8] sm:$0xff] %v26_v3 }
   0xa   :  { %39 = dma.vmem_to_hbm [thread:$0]  %s35_s12, 256, %s37_s15, [#allocation4]  }
   0xb   :  { %98 = dma.done.wait [#allocation4], 256  }
   0xc   :  { %99 = vsyncadd [#allocation4], 4294967040 }
   0xd   :  { %44 = vsyncpa [#allocation3], 1 }
   0xe   :  { %45 = vsyncpa [#allocation4], 1 }

</bundles_post_ra>
